<compile_context>
chip_gen: v6e
topology: v6e:2x2x1
jax: 0.10.0
libtpu: 0.0.40
codegen_flags: <defaults>
</compile_context>

<pallas_src>
import functools

import jax
import jax.numpy as jnp
from jax import lax
from jax.experimental import pallas as pl
from jax.experimental.pallas import tpu as pltpu


# ---------------------------------------------------------------------------
# Kernels
# ---------------------------------------------------------------------------

def _grn_fused_kernel(x_ref, gamma_ref, *rest, chunk, n_chunks, has_bias):
    """Fused GRN for a block of Nb whole images.

    x_ref: (Nb, HW, C) native dtype; gamma_ref/(beta_ref): (1, 1, C); o_ref like x_ref.
    """
    if has_bias:
        beta_ref, o_ref = rest
    else:
        (o_ref,) = rest

    nb, hw, c = x_ref.shape

    # f32 accumulation of the spatial sum-of-squares, per (n, c), chunked over
    # HW so only chunk-sized f32 temporaries are live.
    if n_chunks == 1:
        xf = x_ref[...].astype(jnp.float32)
        sumsq = jnp.sum(xf * xf, axis=1, keepdims=True)            # (Nb,1,C)
    else:
        def body(i, acc):
            start = pl.multiple_of(i * chunk, chunk)
            xc = x_ref[:, pl.ds(start, chunk), :].astype(jnp.float32)
            return acc + jnp.sum(xc * xc, axis=1, keepdims=True)

        unroll = True if n_chunks <= 8 else 8
        sumsq = lax.fori_loop(0, n_chunks, body,
                              jnp.zeros((nb, 1, c), jnp.float32),
                              unroll=unroll)

    gx = jnp.sqrt(sumsq)                                           # (Nb,1,C)
    gx_mean = jnp.mean(gx, axis=-1, keepdims=True)                 # (Nb,1,1)
    nx = gx / (gx_mean + 1e-6)                                     # tiny; exact

    x = x_ref[...]
    scale = (gamma_ref[...].astype(jnp.float32) * nx + 1.0).astype(x.dtype)
    out = scale * x
    if has_bias:
        out = out + beta_ref[...].astype(x.dtype)
    o_ref[...] = out.astype(o_ref.dtype)


def _grn_sumsq_kernel(x_ref, acc_ref):
    """Two-pass, pass 1: accumulate sum-of-squares over HW tiles.

    x_ref: (1, thw, C); acc_ref (output, resident across the last grid axis): (1, 1, C) f32.
    """
    @pl.when(pl.program_id(2) == 0)
    def _():
        acc_ref[...] = jnp.zeros_like(acc_ref)

    xf = x_ref[...].astype(jnp.float32)
    acc_ref[...] += jnp.sum(xf * xf, axis=1, keepdims=True)


def _grn_apply_kernel(x_ref, sumsq_ref, gamma_ref, *rest, has_bias):
    """Two-pass, pass 2: compute the per-(n,c) scale in-kernel and apply it.

    x_ref: (1, thw, C); sumsq_ref: (1, n_split, C) f32 partial sums;
    gamma_ref/(beta_ref): (1, 1, C).
    """
    if has_bias:
        beta_ref, o_ref = rest
    else:
        (o_ref,) = rest

    ss = jnp.sum(sumsq_ref[...], axis=1, keepdims=True)            # (1,1,C)
    gx = jnp.sqrt(ss)
    nx = gx / (jnp.mean(gx, axis=-1, keepdims=True) + 1e-6)

    x = x_ref[...]
    scale = (gamma_ref[...].astype(jnp.float32) * nx + 1.0).astype(x.dtype)
    out = scale * x
    if has_bias:
        out = out + beta_ref[...].astype(x.dtype)
    o_ref[...] = out.astype(o_ref.dtype)


# ---------------------------------------------------------------------------
# Wrappers
# ---------------------------------------------------------------------------

def _round_up(v, m):
    return ((v + m - 1) // m) * m


def _vmem_capacity_bytes():
    """Physical VMEM per core; conservative 64 MiB (v7x) if the query fails."""
    try:
        info = pltpu.get_tpu_info()
        cap = getattr(info, "vmem_capacity_bytes", None)
        if cap:
            return int(cap)
    except Exception:
        pass
    return 64 * 1024 * 1024


def _pick_divisor_tile(hw, c, itemsize, align, target_bytes):
    """Largest multiple of `align` that divides hw with tile <= target_bytes."""
    best = None
    t = align
    while t <= hw:
        if hw % t == 0 and t * c * itemsize <= target_bytes:
            best = t
        t += align
    return best


def _grn_fused(x3, g3, b3, nb, chunk, vmem_limit):
    N, HW, C = x3.shape
    has_bias = b3 is not None
    n_chunks = HW // chunk if chunk < HW else 1
    kernel = functools.partial(_grn_fused_kernel, chunk=chunk,
                               n_chunks=n_chunks, has_bias=has_bias)

    in_specs = [
        pl.BlockSpec((nb, HW, C), lambda i: (i, 0, 0)),
        pl.BlockSpec((1, 1, C), lambda i: (0, 0, 0)),
    ]
    args = [x3, g3]
    if has_bias:
        in_specs.append(pl.BlockSpec((1, 1, C), lambda i: (0, 0, 0)))
        args.append(b3)

    return pl.pallas_call(
        kernel,
        out_shape=jax.ShapeDtypeStruct((N, HW, C), x3.dtype),
        grid_spec=pltpu.PrefetchScalarGridSpec(
            num_scalar_prefetch=0,
            grid=(N // nb,),
            in_specs=in_specs,
            out_specs=pl.BlockSpec((nb, HW, C), lambda i: (i, 0, 0)),
        ),
        compiler_params=pltpu.CompilerParams(
            dimension_semantics=("parallel",),
            vmem_limit_bytes=int(vmem_limit),
        ),
    )(*args)


def _grn_two_pass(x3, g3, b3, thw, n_split, vmem_limit):
    N, HW, C = x3.shape
    has_bias = b3 is not None
    n_hw = HW // thw
    tiles_per_split = n_hw // n_split

    # Pass 1: per-(n, split, c) partial sums of squares; reduction axis last.
    sumsq = pl.pallas_call(
        _grn_sumsq_kernel,
        out_shape=jax.ShapeDtypeStruct((N * n_split, 1, C), jnp.float32),
        grid_spec=pltpu.PrefetchScalarGridSpec(
            num_scalar_prefetch=0,
            grid=(N, n_split, tiles_per_split),
            in_specs=[pl.BlockSpec(
                (1, thw, C),
                lambda n, s, t: (n, s * tiles_per_split + t, 0))],
            out_specs=pl.BlockSpec(
                (1, 1, C),
                lambda n, s, t: (n * n_split + s, 0, 0)),
        ),
        compiler_params=pltpu.CompilerParams(
            dimension_semantics=("parallel", "parallel", "arbitrary"),
            vmem_limit_bytes=int(vmem_limit),
        ),
    )(x3)
    sumsq = sumsq.reshape(N, n_split, C)

    # Pass 2: fold sqrt / channel-mean / scale math in-kernel (tiny per tile)
    # and apply the elementwise scale/shift; both grid axes parallel.
    kernel = functools.partial(_grn_apply_kernel, has_bias=has_bias)
    in_specs = [
        pl.BlockSpec((1, thw, C), lambda n, t: (n, t, 0)),
        pl.BlockSpec((1, n_split, C), lambda n, t: (n, 0, 0)),
        pl.BlockSpec((1, 1, C), lambda n, t: (0, 0, 0)),
    ]
    args = [x3, sumsq, g3]
    if has_bias:
        in_specs.append(pl.BlockSpec((1, 1, C), lambda n, t: (0, 0, 0)))
        args.append(b3)

    return pl.pallas_call(
        kernel,
        out_shape=jax.ShapeDtypeStruct((N, HW, C), x3.dtype),
        grid_spec=pltpu.PrefetchScalarGridSpec(
            num_scalar_prefetch=0,
            grid=(N, n_hw),
            in_specs=in_specs,
            out_specs=pl.BlockSpec((1, thw, C), lambda n, t: (n, t, 0)),
        ),
        compiler_params=pltpu.CompilerParams(
            dimension_semantics=("parallel", "parallel"),
            vmem_limit_bytes=int(vmem_limit),
        ),
    )(*args)


def grn_nhwc(x, gamma, beta=None, *, force_two_pass=False, hw_tile=None,
             chunk_rows=None):
    """GRNwithNHWC forward.  x: (N, H, W, C); gamma/beta: (1, 1, 1, C).

    beta=None corresponds to use_bias=False.
    """
    N, H, W, C = x.shape
    HW = H * W
    has_bias = beta is not None

    # Lane-dense presentation: (N, HW, C) -> C on lanes, HW on sublanes.
    x3 = x.reshape(N, HW, C)
    g3 = gamma.reshape(1, 1, C)
    b3 = beta.reshape(1, 1, C) if has_bias else None

    itemsize = jnp.dtype(x.dtype).itemsize
    align = max(8, 32 // itemsize)          # sublane alignment: f32 8, bf16 16, int8 32
    per_image = HW * C * itemsize

    vmem_cap = _vmem_capacity_bytes()
    large_vmem = vmem_cap >= (100 << 20)    # v5e/v6e (128 MiB) vs v7x (64 MiB)
    block_target = (6 << 20) if large_vmem else (3 << 20)       # native bytes / step
    chunk_target = (1 << 20) if large_vmem else (512 << 10)     # f32 bytes / chunk
    vmem_limit = min(int(0.9 * vmem_cap), 100 * 1024 * 1024)
    budget = int(0.7 * vmem_cap)

    if chunk_rows is not None and HW % int(chunk_rows) == 0:
        chunk = int(chunk_rows)
    else:
        chunk = _pick_divisor_tile(HW, C, 4, align, chunk_target) or HW

    def fused_bytes(nb):
        # 2 input + 2 output pipeline buffers (native dtype) + chunk-sized f32
        # temporaries (x chunk, its square, accumulator).
        return 4 * nb * per_image + 3 * nb * chunk * C * 4

    two_pass = force_two_pass or fused_bytes(1) > budget

    if two_pass:
        if hw_tile is not None:
            hw_tile = max(align, _round_up(int(hw_tile), align))
        else:
            hw_tile = _pick_divisor_tile(HW, C, itemsize, align, block_target)

        x3p, HW_run = x3, HW
        if hw_tile is None or HW % hw_tile != 0:
            if hw_tile is None:
                rows = (block_target // max(1, C * itemsize)) // align * align
                hw_tile = max(align, min(rows, _round_up(HW, align)))
            # No exact divisor: zero-pad HW (zeros do not change the L2 norm).
            HW_run = _round_up(HW, hw_tile)
            if HW_run != HW:
                x3p = jnp.pad(x3, ((0, 0), (0, HW_run - HW), (0, 0)))

        n_hw = HW_run // hw_tile
        # Split the reduction across a parallel sub-axis when N is small so
        # both v7x TensorCores stay busy in pass 1 (harmless on 1-TC chips).
        n_split = 2 if (N <= 2 and n_hw >= 2 and n_hw % 2 == 0) else 1
        out3 = _grn_two_pass(x3p, g3, b3, hw_tile, n_split, vmem_limit)
        if HW_run != HW:
            out3 = out3[:, :HW, :]
    else:
        # Batch whole images per grid step toward the block target, but keep
        # at least min(N, 4) grid steps for pipelining / megacore sharding.
        min_steps = min(N, 4)
        nb = 1
        for cand in range(1, N + 1):
            if N % cand:
                continue
            if fused_bytes(cand) > budget or (N // cand) < min_steps:
                break
            nb = cand
            if cand * per_image >= block_target:
                break
        out3 = _grn_fused(x3, g3, b3, nb, chunk, vmem_limit)

    return out3.reshape(N, H, W, C)


# ---------------------------------------------------------------------------
# Reference (pure JAX) and self-test
# ---------------------------------------------------------------------------

def grn_reference(x, gamma, beta=None):
    xf = x.astype(jnp.float32)
    gx = jnp.sqrt(jnp.sum(xf * xf, axis=(1, 2), keepdims=True))
    nx = gx / (jnp.mean(gx, axis=-1, keepdims=True) + 1e-6)
    out = (gamma.astype(jnp.float32) * nx + 1.0) * xf
    if beta is not None:
        out = out + beta.astype(jnp.float32)
    return out.astype(x.dtype)


if __name__ == "__main__":
    key = jax.random.PRNGKey(0)
    kx, kg, kb, kx2, kx3 = jax.random.split(key, 5)

    # --- Test 1: small NHWC, f32, fused single-pass path --------------------
    N, H, W, C = 2, 16, 16, 4
    x = jax.random.normal(kx, (N, H, W, C), dtype=jnp.float32)
    gamma = 0.1 * jax.random.normal(kg, (1, 1, 1, C), dtype=jnp.float32)
    beta = 0.1 * jax.random.normal(kb, (1, 1, 1, C), dtype=jnp.float32)

    ref = grn_reference(x, gamma, beta)
    out = jax.block_until_ready(grn_nhwc(x, gamma, beta))
    assert out.shape == ref.shape and out.dtype == ref.dtype
    assert jnp.allclose(out, ref, atol=1e-4, rtol=1e-4), "fused path mismatch"

    # --- Test 1b: fused path with forced HW chunking (fori_loop accumulate) -
    out_c = jax.block_until_ready(grn_nhwc(x, gamma, beta, chunk_rows=64))
    assert jnp.allclose(out_c, ref, atol=1e-4, rtol=1e-4), "chunked fused mismatch"

    # --- Test 2: forced two-pass HW-tiled path -------------------------------
    out2 = jax.block_until_ready(
        grn_nhwc(x, gamma, beta, force_two_pass=True, hw_tile=64))
    assert jnp.allclose(out2, ref, atol=1e-4, rtol=1e-4), "two-pass mismatch"

    # --- Test 3: no-bias (use_bias=False) specialization ---------------------
    ref_nb = grn_reference(x, gamma, None)
    out_nb = jax.block_until_ready(grn_nhwc(x, gamma, None))
    assert jnp.allclose(out_nb, ref_nb, atol=1e-4, rtol=1e-4), "no-bias mismatch"

    # --- Test 4: bf16 input, lane-dense C (multiple of 128), fused ----------
    N2, H2, W2, C2 = 2, 8, 8, 128
    xb = jax.random.normal(kx2, (N2, H2, W2, C2), dtype=jnp.float32).astype(jnp.bfloat16)
    gb = 0.1 * jax.random.normal(kg, (1, 1, 1, C2), dtype=jnp.float32)
    bb = 0.1 * jax.random.normal(kb, (1, 1, 1, C2), dtype=jnp.float32)
    refb = grn_reference(xb, gb, bb)
    outb = jax.block_until_ready(grn_nhwc(xb, gb, bb))
    err = jnp.max(jnp.abs(outb.astype(jnp.float32) - refb.astype(jnp.float32)))
    assert float(err) < 1e-1, "bf16 fused path mismatch"

    # --- Test 5: two-pass with parallel HW split (N=1) -----------------------
    x5 = jax.random.normal(kx3, (1, 16, 16, 64), dtype=jnp.float32)
    g5 = 0.1 * jax.random.normal(kg, (1, 1, 1, 64), dtype=jnp.float32)
    b5 = 0.1 * jax.random.normal(kb, (1, 1, 1, 64), dtype=jnp.float32)
    ref5 = grn_reference(x5, g5, b5)
    out5 = jax.block_until_ready(
        grn_nhwc(x5, g5, b5, force_two_pass=True, hw_tile=64))
    assert jnp.allclose(out5, ref5, atol=1e-4, rtol=1e-4), "split two-pass mismatch"

    # --- Test 6: awkward H*W (no exact divisor) -> padded two-pass ----------
    x6 = jax.random.normal(kx3, (1, 9, 9, 128), dtype=jnp.float32).astype(jnp.bfloat16)
    g6 = 0.1 * jax.random.normal(kg, (1, 1, 1, 128), dtype=jnp.float32)
    ref6 = grn_reference(x6, g6, None)
    out6 = jax.block_until_ready(grn_nhwc(x6, g6, None, force_two_pass=True))
    err6 = jnp.max(jnp.abs(out6.astype(jnp.float32) - ref6.astype(jnp.float32)))
    assert float(err6) < 1e-1, "padded two-pass mismatch"

    print("KERNEL_OK")
</pallas_src>

<mosaic_0001>
module attributes {stable_mosaic.version = 11 : i64} {
  func.func @_grn_fused_kernel(%arg0: i32, %arg1: memref<1x256x4xf32, #tpu.memory_space<vmem>>, %arg2: memref<1x1x4xf32, #tpu.memory_space<vmem>>, %arg3: memref<1x1x4xf32, #tpu.memory_space<vmem>>, %arg4: memref<1x256x4xf32, #tpu.memory_space<vmem>>) attributes {dimension_semantics = [#tpu.dimension_semantics<parallel>], iteration_bounds = array<i64: 2>, scalar_prefetch = 0 : i64, scratch_operands = 0 : i64, tpu.core_type = #tpu.core_type<tc>, window_params = [{transform_indices = @transform_0, window_bounds = array<i64: 1, 256, 4>}, {pipeline_mode = #tpu.pipeline_mode<synchronous>, transform_indices = @transform_1, window_bounds = array<i64: 1, 1, 4>}, {pipeline_mode = #tpu.pipeline_mode<synchronous>, transform_indices = @transform_2, window_bounds = array<i64: 1, 1, 4>}, {transform_indices = @transform_3, window_bounds = array<i64: 1, 256, 4>}]} {
    %c0 = arith.constant 0 : index
    %c0_0 = arith.constant 0 : index
    %c0_1 = arith.constant 0 : index
    %0 = vector.load %arg1[%c0, %c0_0, %c0_1] : memref<1x256x4xf32, #tpu.memory_space<vmem>>, vector<1x256x4xf32>
    %1 = arith.mulf %0, %0 : vector<1x256x4xf32>
    %cst = arith.constant dense<0.000000e+00> : vector<1x4xf32>
    %2 = vector.multi_reduction <add>, %1, %cst [1] : vector<1x256x4xf32> to vector<1x4xf32>
    %3 = vector.shape_cast %2 : vector<1x4xf32> to vector<1x1x4xf32>
    %4 = math.sqrt %3 : vector<1x1x4xf32>
    %cst_2 = arith.constant dense<0.000000e+00> : vector<1x1xf32>
    %5 = vector.multi_reduction <add>, %4, %cst_2 [2] : vector<1x1x4xf32> to vector<1x1xf32>
    %6 = vector.shape_cast %5 : vector<1x1xf32> to vector<1x1x1xf32>
    %cst_3 = arith.constant 4.000000e+00 : f32
    %7 = vector.broadcast %cst_3 : f32 to vector<1x1x1xf32>
    %8 = arith.divf %6, %7 : vector<1x1x1xf32>
    %cst_4 = arith.constant 9.99999997E-7 : f32
    %9 = vector.broadcast %cst_4 : f32 to vector<1x1x1xf32>
    %10 = arith.addf %8, %9 : vector<1x1x1xf32>
    %11 = vector.broadcast %10 : vector<1x1x1xf32> to vector<1x1x4xf32>
    %12 = arith.divf %4, %11 : vector<1x1x4xf32>
    %c0_5 = arith.constant 0 : index
    %c0_6 = arith.constant 0 : index
    %c0_7 = arith.constant 0 : index
    %13 = vector.load %arg1[%c0_5, %c0_6, %c0_7] : memref<1x256x4xf32, #tpu.memory_space<vmem>>, vector<1x256x4xf32>
    %c0_8 = arith.constant 0 : index
    %c0_9 = arith.constant 0 : index
    %c0_10 = arith.constant 0 : index
    %14 = vector.load %arg2[%c0_8, %c0_9, %c0_10] : memref<1x1x4xf32, #tpu.memory_space<vmem>>, vector<1x1x4xf32>
    %15 = arith.mulf %14, %12 : vector<1x1x4xf32>
    %cst_11 = arith.constant 1.000000e+00 : f32
    %16 = vector.broadcast %cst_11 : f32 to vector<1x1x4xf32>
    %17 = arith.addf %15, %16 : vector<1x1x4xf32>
    %18 = vector.broadcast %17 : vector<1x1x4xf32> to vector<1x256x4xf32>
    %19 = arith.mulf %18, %13 : vector<1x256x4xf32>
    %c0_12 = arith.constant 0 : index
    %c0_13 = arith.constant 0 : index
    %c0_14 = arith.constant 0 : index
    %20 = vector.load %arg3[%c0_12, %c0_13, %c0_14] : memref<1x1x4xf32, #tpu.memory_space<vmem>>, vector<1x1x4xf32>
    %21 = vector.broadcast %20 : vector<1x1x4xf32> to vector<1x256x4xf32>
    %22 = arith.addf %19, %21 : vector<1x256x4xf32>
    %c0_15 = arith.constant 0 : index
    %c0_16 = arith.constant 0 : index
    %c0_17 = arith.constant 0 : index
    %23 = vector.load %arg4[%c0_15, %c0_16, %c0_17] : memref<1x256x4xf32, #tpu.memory_space<vmem>>, vector<1x256x4xf32>
    tpu.vector_store %arg4[%c0_15, %c0_16, %c0_17], %22 {strides = array<i32>} : memref<1x256x4xf32, #tpu.memory_space<vmem>>, vector<1x256x4xf32>,
    return
  }
  func.func @transform_0(%arg0: i32) -> (i32, i32, i32) {
    %c0_i32 = arith.constant 0 : i32
    %c0_i32_0 = arith.constant 0 : i32
    %c0_i32_1 = arith.constant 0 : i32
    return %arg0, %c0_i32, %c0_i32_0 : i32, i32, i32
  }
  func.func @transform_1(%arg0: i32) -> (i32, i32, i32) {
    %c0_i32 = arith.constant 0 : i32
    %c0_i32_0 = arith.constant 0 : i32
    %c0_i32_1 = arith.constant 0 : i32
    %c0_i32_2 = arith.constant 0 : i32
    return %c0_i32, %c0_i32_0, %c0_i32_1 : i32, i32, i32
  }
  func.func @transform_2(%arg0: i32) -> (i32, i32, i32) {
    %c0_i32 = arith.constant 0 : i32
    %c0_i32_0 = arith.constant 0 : i32
    %c0_i32_1 = arith.constant 0 : i32
    %c0_i32_2 = arith.constant 0 : i32
    return %c0_i32, %c0_i32_0, %c0_i32_1 : i32, i32, i32
  }
  func.func @transform_3(%arg0: i32) -> (i32, i32, i32) {
    %c0_i32 = arith.constant 0 : i32
    %c0_i32_0 = arith.constant 0 : i32
    %c0_i32_1 = arith.constant 0 : i32
    return %arg0, %c0_i32, %c0_i32_0 : i32, i32, i32
  }
}

</mosaic_0001>

<bundles_post_ra>
// kernel: tpu_custom_call.1
= control target key start
LH: loop header
LB: loop body
LE: loop exit
PB: predicated region body
PF: predicated region fallthrough
CT: control target
= control target key end

     0   :  { %s541_s12 = smov 0   ;;  %s864_s0 = inlined_call_operand.vmem [shape: f32[2,256,4], index: 0, kind: input, shape index: {}]   ;;  %s865_s1 = inlined_call_operand.vmem [shape: f32[1,1,4], index: 1, kind: input, shape index: {}]   ;;  %s866_s2 = inlined_call_operand.vmem [shape: f32[1,1,4], index: 2, kind: input, shape index: {}]   ;;  %s867_s3 = inlined_call_operand.vmem [shape: f32[2,256,4], index: 3, kind: output, shape index: {}]  }
   0x1 LB: > { %s487_s13 = sadd.s32 4294967295, %s519_s12   ;;  %p491_p0 = scmp.ge.s32.totalorder %s519_s12, 1  ;;  %s519_s12 = sphi %s541_s12, %s13_s12  }
   0x2   : > { %p137_p1 = scmp.lt.s32.totalorder %s519_s12, 3 }
   0x4   : > { %p138_p2 = pnand %p491_p0, %p137_p1 }
   0x5   : > { %p161_p3 = scmp.lt.s32.totalorder (!%p138_p2), %s487_s13, 1 }
   0x6   : > { %141 = sbr.rel (%p138_p2) target bundleno = 302 (0x12e), region = 32 }
   0xb   : > { %s869_s13 = smov (!%p161_p3, %s487_s13), 1  ;;  %vm235_vm0 = vcmask 31744  }
   0xc   : > { %s499_s14 = sshll.u32 %s869_s13, 8 }
   0xd   : > { %s557_s17 = scalar_lea.vmem %s864_s0, %s499_s14  ;;  %s791_s24 = scalar_lea.vmem %s867_s3, %s499_s14 }
   0xe   : > { %v560_v0 = vld [vmem:[%s557_s17] sm:$0xff]  ;;  %v563_v1 = vld [vmem:[%s557_s17 + $0x8] sm:$0xff]  ;;  %v566_v2 = vld [vmem:[%s557_s17 + $0x10] sm:$0xff] }
   0xf   : > { %v569_v3 = vld [vmem:[%s557_s17 + $0x18] sm:$0xff]  ;;  %v203_v4 = vmul.f32 %v560_v0, %v560_v0  ;;  %v204_v5 = vmul.f32 %v563_v1, %v563_v1  ;;  %v205_v6 = vmul.f32 %v566_v2, %v566_v2  ;;  %v578_v7 = vld [vmem:[%s557_s17 + $0x20] sm:$0xff]  ;;  %v582_v9 = vld [vmem:[%s557_s17 + $0x28] sm:$0xff] }
  0x10   : > { %v206_v10 = vmul.f32 %v569_v3, %v569_v3  ;;  %v588_v12 = vld [vmem:[%s557_s17 + $0x30] sm:$0xff]  ;;  %v207_v14 = vmul.f32 %v578_v7, %v578_v7  ;;  %v594_v16 = vld [vmem:[%s557_s17 + $0x38] sm:$0xff]  ;;  %v208_v17 = vmul.f32 %v582_v9, %v582_v9  ;;  %v602_v21 = vld [vmem:[%s557_s17 + $0x40] sm:$0xff] }
  0x11   : > { %v236_v8 = vsel %vm235_vm0, %v203_v4, 0.0  ;;  %v237_v11 = vsel %vm235_vm0, %v204_v5, 0.0  ;;  %v239_v15 = vsel %vm235_vm0, %v205_v6, 0.0  ;;  %v209_v19 = vmul.f32 %v588_v12, %v588_v12  ;;  %v608_v25 = vld [vmem:[%s557_s17 + $0x48] sm:$0xff]  ;;  %v615_v30 = vld [vmem:[%s557_s17 + $0x50] sm:$0xff]  ;;  %v621_v34 = vld [vmem:[%s557_s17 + $0x58] sm:$0xff] }
  0x12   : > { %v238_v13 = vadd.f32 %v237_v11, %v236_v8  ;;  %v241_v20 = vsel %vm235_vm0, %v206_v10, 0.0  ;;  %v210_v23 = vmul.f32 %v594_v16, %v594_v16  ;;  %v243_v24 = vsel %vm235_vm0, %v207_v14, 0.0  ;;  %v627_v38 = vld [vmem:[%s557_s17 + $0x60] sm:$0xff]  ;;  %v633_v42 = vld [vmem:[%s557_s17 + $0x68] sm:$0xff]  ;;  %v639_v46 = vld [vmem:[%s557_s17 + $0x70] sm:$0xff] }
  0x13   : > { %v245_v27 = vsel %vm235_vm0, %v208_v17, 0.0  ;;  %v211_v28 = vmul.f32 %v602_v21, %v602_v21  ;;  %v247_v29 = vsel %vm235_vm0, %v209_v19, 0.0  ;;  %v212_v32 = vmul.f32 %v608_v25, %v608_v25  ;;  %v645_v50 = vld [vmem:[%s557_s17 + $0x78] sm:$0xff]  ;;  %v651_v54 = vld [vmem:[%s557_s17 + $0x80] sm:$0xff]  ;;  %v657_v58 = vld [vmem:[%s557_s17 + $0x88] sm:$0xff] }
  0x14   : > { %v240_v18 = vadd.f32 %v239_v15, %v238_v13  ;;  %v249_v33 = vsel %vm235_vm0, %v210_v23, 0.0  ;;  %v213_v36 = vmul.f32 %v615_v30, %v615_v30  ;;  %v214_v40 = vmul.f32 %v621_v34, %v621_v34  ;;  %v663_v62 = vld [vmem:[%s557_s17 + $0x90] sm:$0xff]  ;;  %v669_v6 = vld [vmem:[%s557_s17 + $0x98] sm:$0xff]  ;;  %v675_v13 = vld [vmem:[%s557_s17 + $0xa0] sm:$0xff] }
  0x15   : > { %v251_v37 = vsel %vm235_vm0, %v211_v28, 0.0  ;;  %v253_v41 = vsel %vm235_vm0, %v212_v32, 0.0  ;;  %v215_v44 = vmul.f32 %v627_v38, %v627_v38  ;;  %v216_v48 = vmul.f32 %v633_v42, %v633_v42  ;;  %v687_v23 = vld [vmem:[%s557_s17 + $0xb0] sm:$0xff]  ;;  %v693_v28 = vld [vmem:[%s557_s17 + $0xb8] sm:$0xff] }
  0x16   : > { %v242_v22 = vadd.f32 %v241_v20, %v240_v18  ;;  %v255_v45 = vsel %vm235_vm0, %v213_v36, 0.0  ;;  %v257_v49 = vsel %vm235_vm0, %v214_v40, 0.0  ;;  %v217_v52 = vmul.f32 %v639_v46, %v639_v46  ;;  %v681_v18 = vld [vmem:[%s557_s17 + $0xa8] sm:$0xff] }
  0x17   : > { %v259_v53 = vsel %vm235_vm0, %v215_v44, 0.0  ;;  %v218_v56 = vmul.f32 %v645_v50, %v645_v50  ;;  %v261_v57 = vsel %vm235_vm0, %v216_v48, 0.0  ;;  %v219_v60 = vmul.f32 %v651_v54, %v651_v54  ;;  %v711_v44 = vld [vmem:[%s557_s17 + $0xd0] sm:$0xff] }
  0x18   : > { %v244_v26 = vadd.f32 %v243_v24, %v242_v22  ;;  %v263_v61 = vsel %vm235_vm0, %v217_v52, 0.0  ;;  %v220_v4 = vmul.f32 %v657_v58, %v657_v58  ;;  %v221_v10 = vmul.f32 %v663_v62, %v663_v62 }
  0x19   : > { %v265_v5 = vsel %vm235_vm0, %v218_v56, 0.0  ;;  %v267_v11 = vsel %vm235_vm0, %v219_v60, 0.0  ;;  %v222_v15 = vmul.f32 %v669_v6, %v669_v6  ;;  %v223_v20 = vmul.f32 %v675_v13, %v675_v13  ;;  %v729_v60 = vld [vmem:[%s557_s17 + $0xe8] sm:$0xff] }
  0x1a   : > { %v246_v31 = vadd.f32 %v245_v27, %v244_v26  ;;  %v269_v17 = vsel %vm235_vm0, %v220_v4, 0.0  ;;  %v271_v22 = vsel %vm235_vm0, %v221_v10, 0.0  ;;  %v224_v26 = vmul.f32 %v681_v18, %v681_v18 }
  0x1b   : > { %v273_v27 = vsel %vm235_vm0, %v222_v15, 0.0  ;;  %v275_v32 = vsel %vm235_vm0, %v223_v20, 0.0  ;;  %v226_v36 = vmul.f32 %v693_v28, %v693_v28  ;;  %v229_v52 = vmul.f32 %v711_v44, %v711_v44 }
  0x1c   : > { %v248_v35 = vadd.f32 %v247_v29, %v246_v31  ;;  %v225_v31 = vmul.f32 %v687_v23, %v687_v23  ;;  %v232_v10 = vmul.f32 %v729_v60, %v729_v60 }
  0x1d   : > { %v281_v48 = vsel %vm235_vm0, %v226_v36, 0.0  ;;  %v287_v4 = vsel %vm235_vm0, %v229_v52, 0.0 }
  0x1e   : > { %v250_v39 = vadd.f32 %v249_v33, %v248_v35  ;;  %v699_v33 = vld [vmem:[%s557_s17 + $0xc0] sm:$0xff] }
  0x20   : > { %v252_v43 = vadd.f32 %v251_v37, %v250_v39  ;;  %v277_v37 = vsel %vm235_vm0, %v224_v26, 0.0  ;;  %v705_v39 = vld [vmem:[%s557_s17 + $0xc8] sm:$0xff] }
  0x22   : > { %v254_v47 = vadd.f32 %v253_v41, %v252_v43  ;;  %v227_v41 = vmul.f32 %v699_v33, %v699_v33  ;;  %v279_v43 = vsel %vm235_vm0, %v225_v31, 0.0 }
  0x24   : > { %v256_v51 = vadd.f32 %v255_v45, %v254_v47  ;;  %v228_v47 = vmul.f32 %v705_v39, %v705_v39 }
  0x26   : > { %v258_v55 = vadd.f32 %v257_v49, %v256_v51  ;;  %v717_v49 = vld [vmem:[%s557_s17 + $0xd8] sm:$0xff] }
  0x28   : > { %v260_v59 = vadd.f32 %v259_v53, %v258_v55  ;;  %v283_v53 = vsel %vm235_vm0, %v227_v41, 0.0  ;;  %v723_v55 = vld [vmem:[%s557_s17 + $0xe0] sm:$0xff] }
  0x2a   : > { %v262_v63 = vadd.f32 %v261_v57, %v260_v59  ;;  %v230_v57 = vmul.f32 %v717_v49, %v717_v49  ;;  %v285_v59 = vsel %vm235_vm0, %v228_v47, 0.0 }
  0x2c   : > { %v264_v8 = vadd.f32 %v263_v61, %v262_v63  ;;  %v231_v63 = vmul.f32 %v723_v55, %v723_v55 }
  0x2e   : > { %v266_v14 = vadd.f32 %v265_v5, %v264_v8  ;;  %v735_v5 = vld [vmem:[%s557_s17 + $0xf0] sm:$0xff] }
  0x30   : > { %v268_v19 = vadd.f32 %v267_v11, %v266_v14  ;;  %v289_v11 = vsel %vm235_vm0, %v230_v57, 0.0  ;;  %v741_v14 = vld [vmem:[%s557_s17 + $0xf8] sm:$0xff] }
  0x32   : > { %v270_v24 = vadd.f32 %v269_v17, %v268_v19  ;;  %v233_v17 = vmul.f32 %v735_v5, %v735_v5  ;;  %v291_v19 = vsel %vm235_vm0, %v231_v63, 0.0  ;;  %v324_v63 = vlaneseq }
  0x34   : > { %v272_v29 = vadd.f32 %v271_v22, %v270_v24  ;;  %v234_v22 = vmul.f32 %v741_v14, %v741_v14  ;;  %v293_v24 = vsel %vm235_vm0, %v232_v10, 0.0  ;;  %v320_v10 = vld [vmem:[%s865_s1] sm:$0x1] }
  0x36   : > { %v274_v35 = vadd.f32 %v273_v27, %v272_v29  ;;  %v295_v27 = vsel %vm235_vm0, %v233_v17, 0.0  ;;  %v297_v31 = vsel %vm235_vm0, %v234_v22, 0.0 }
  0x38   : > { %v276_v40 = vadd.f32 %v275_v32, %v274_v35 }
  0x3a   : > { %v278_v45 = vadd.f32 %v277_v37, %v276_v40 }
  0x3c   : > { %v280_v51 = vadd.f32 %v279_v43, %v278_v45 }
  0x3e   : > { %v282_v56 = vadd.f32 %v281_v48, %v280_v51 }
  0x40   : > { %v284_v61 = vadd.f32 %v283_v53, %v282_v56 }
  0x42   : > { %v286_v8 = vadd.f32 %v285_v59, %v284_v61 }
  0x44   : > { %v288_v15 = vadd.f32 %v287_v4, %v286_v8  ;;  %v325_v4 = vshrl.u32 %v324_v63, 7 }
  0x46   : > { %v290_v20 = vadd.f32 %v289_v11, %v288_v15  ;;  %v326_v17 = vsub.s32 0, %v325_v4 }
  0x48   : > { %v292_v26 = vadd.f32 %v291_v19, %v290_v20 }
  0x4a   : > { %v294_v29 = vadd.f32 %v293_v24, %v292_v26 }
  0x4c   : > { %v296_v32 = vadd.f32 %v295_v27, %v294_v29 }
  0x4e   : > { %v298_v35 = vadd.f32 %v297_v31, %v296_v32 }
  0x50   : > { %v299_v36 = vrot.slane %v298_v35, 4 }
  0x52   : > { %v300_v37 = vadd.f32 %v299_v36, %v298_v35 }
  0x54   : > { %v301_v40 = vrot.slane %v300_v37, 2 }
  0x56   : > { %v302_v41 = vadd.f32 %v301_v40, %v300_v37 }
  0x58   : > { %v303_v43 = vrot.slane %v302_v41, 1 }
  0x5a   : > { %v304_v45 = vadd.f32 %v303_v43, %v302_v41 }
  0x5c   : > { %509 = vrsqrt.f32 %v304_v45  ;;  %vm307_vm1 = vcmp.eq.f32.partialorder %v304_v45, inf  ;;  %v310_v48 = vand.u32 2147483648, %v304_v45  ;;  %vm309_vm2 = vcmp.eq.f32.partialorder %v304_v45, 0.0 }
  0x69   : > { %v510_v47 = vpop.eup %509 }
  0x6a   : > { %v306_v51 = vmul.f32 %v510_v47, %v304_v45 }
  0x6c   : > { %v308_v52 = vsel %vm307_vm1, %v304_v45, %v306_v51 }
  0x6d   : > { %v311_v53 = vsel %vm309_vm2, %v310_v48, %v308_v52 }
  0x6e   : > { %v312_v56 = vsel %vm235_vm0, %v311_v53, 0.0 }
  0x6f   : > { %313 = vadd.xlane.f32.xlu0 %v312_v56 }
  0xf8   : > { %v314_v57 = vpop.xlane.xlu0 %313 }
  0xf9   : > { %v316_v59 = vmul.f32 0.25, %v314_v57 }
  0xfb   : > { %v317_v61 = vadd.f32 1e-06, %v316_v59 }
  0xfd   : > { %511 = vrcp.f32 %v317_v61 }
 0x10a   : > { %v512_v8 = vpop.eup %511 }
 0x10b   : > { %v319_v11 = vmul.f32 %v512_v8, %v311_v53 }
 0x10d   : > { %v321_v15 = vmul.f32 %v320_v10, %v319_v11 }
 0x10f   : > { %v322_v19 = vadd.f32 1.0, %v321_v15 }
 0x111   : > { %v327_v20 = vrot.slane %v322_v19, %v326_v17 }
 0x113   : > { %v329_v22 = vmul.f32 %v327_v20, %v560_v0  ;;  %v330_v24 = vmul.f32 %v327_v20, %v563_v1  ;;  %v331_v26 = vmul.f32 %v327_v20, %v566_v2  ;;  %v332_v27 = vmul.f32 %v327_v20, %v569_v3 }
 0x114   : > { %v333_v29 = vmul.f32 %v327_v20, %v578_v7  ;;  %v334_v31 = vmul.f32 %v327_v20, %v582_v9  ;;  %v335_v32 = vmul.f32 %v327_v20, %v588_v12  ;;  %v336_v35 = vmul.f32 %v327_v20, %v594_v16 }
 0x115   : > { %v337_v36 = vmul.f32 %v327_v20, %v602_v21  ;;  %v338_v37 = vmul.f32 %v327_v20, %v608_v25  ;;  %v339_v0 = vmul.f32 %v327_v20, %v615_v30  ;;  %v340_v1 = vmul.f32 %v327_v20, %v621_v34 }
 0x116   : > { %v341_v2 = vmul.f32 %v327_v20, %v627_v38  ;;  %v342_v3 = vmul.f32 %v327_v20, %v633_v42  ;;  %v343_v7 = vmul.f32 %v327_v20, %v639_v46  ;;  %v344_v9 = vmul.f32 %v327_v20, %v645_v50  ;;  %v496_v46 = vld [vmem:[%s866_s2] ss:$0 sm:$0xff] }
 0x117   : > { %v345_v12 = vmul.f32 %v327_v20, %v651_v54  ;;  %v346_v16 = vmul.f32 %v327_v20, %v657_v58  ;;  %v347_v21 = vmul.f32 %v327_v20, %v663_v62  ;;  %v348_v25 = vmul.f32 %v327_v20, %v669_v6 }
 0x118   : > { %v349_v30 = vmul.f32 %v327_v20, %v675_v13  ;;  %v350_v34 = vmul.f32 %v327_v20, %v681_v18  ;;  %v351_v38 = vmul.f32 %v327_v20, %v687_v23  ;;  %v352_v42 = vmul.f32 %v327_v20, %v693_v28 }
 0x119   : > { %v353_v50 = vmul.f32 %v327_v20, %v699_v33  ;;  %v354_v54 = vmul.f32 %v327_v20, %v705_v39  ;;  %v355_v58 = vmul.f32 %v327_v20, %v711_v44  ;;  %v356_v62 = vmul.f32 %v327_v20, %v717_v49 }
 0x11a   : > { %v357_v6 = vmul.f32 %v327_v20, %v723_v55  ;;  %v358_v13 = vmul.f32 %v327_v20, %v729_v60  ;;  %v359_v18 = vmul.f32 %v327_v20, %v735_v5  ;;  %v360_v23 = vmul.f32 %v327_v20, %v741_v14 }
 0x11b   : > { %v368_v28 = vadd.f32 %v496_v46, %v329_v22  ;;  %v369_v33 = vadd.f32 %v496_v46, %v330_v24  ;;  %v370_v39 = vadd.f32 %v496_v46, %v331_v26  ;;  %v371_v44 = vadd.f32 %v496_v46, %v332_v27 }
 0x11c   : > { %v372_v49 = vadd.f32 %v496_v46, %v333_v29  ;;  %v373_v40 = vadd.f32 %v496_v46, %v334_v31  ;;  %v374_v41 = vadd.f32 %v496_v46, %v335_v32  ;;  %v375_v55 = vadd.f32 %v496_v46, %v336_v35 }
 0x11d   : > { %v376_v60 = vadd.f32 %v496_v46, %v337_v36  ;;  %v377_v43 = vadd.f32 %v496_v46, %v338_v37  ;;  %v378_v45 = vadd.f32 %v496_v46, %v339_v0  ;;  %v379_v5 = vadd.f32 %v496_v46, %v340_v1  ;;  %400 = vst.msk [vmem:[%s791_s24] sm:$0xff] %vm235_vm0, %v368_v28 }
 0x11e   : > { %401 = vst.msk [vmem:[%s791_s24 + $0x8] sm:$0xff] %vm235_vm0, %v369_v33  ;;  %402 = vst.msk [vmem:[%s791_s24 + $0x10] sm:$0xff] %vm235_vm0, %v370_v39  ;;  %v380_v14 = vadd.f32 %v496_v46, %v341_v2  ;;  %v381_v47 = vadd.f32 %v496_v46, %v342_v3  ;;  %v382_v48 = vadd.f32 %v496_v46, %v343_v7 }
 0x11f   : > { %403 = vst.msk [vmem:[%s791_s24 + $0x18] sm:$0xff] %vm235_vm0, %v371_v44  ;;  %v383_v51 = vadd.f32 %v496_v46, %v344_v9  ;;  %404 = vst.msk [vmem:[%s791_s24 + $0x20] sm:$0xff] %vm235_vm0, %v372_v49  ;;  %v384_v52 = vadd.f32 %v496_v46, %v345_v12  ;;  %v385_v53 = vadd.f32 %v496_v46, %v346_v16 }
 0x120   : > { %405 = vst.msk [vmem:[%s791_s24 + $0x28] sm:$0xff] %vm235_vm0, %v373_v40  ;;  %406 = vst.msk [vmem:[%s791_s24 + $0x30] sm:$0xff] %vm235_vm0, %v374_v41  ;;  %v386_v56 = vadd.f32 %v496_v46, %v347_v21  ;;  %v387_v57 = vadd.f32 %v496_v46, %v348_v25  ;;  %v388_v59 = vadd.f32 %v496_v46, %v349_v30 }
 0x121   : > { %407 = vst.msk [vmem:[%s791_s24 + $0x38] sm:$0xff] %vm235_vm0, %v375_v55  ;;  %408 = vst.msk [vmem:[%s791_s24 + $0x40] sm:$0xff] %vm235_vm0, %v376_v60  ;;  %v389_v61 = vadd.f32 %v496_v46, %v350_v34  ;;  %v390_v63 = vadd.f32 %v496_v46, %v351_v38  ;;  %v391_v4 = vadd.f32 %v496_v46, %v352_v42 }
 0x122   : > { %409 = vst.msk [vmem:[%s791_s24 + $0x48] sm:$0xff] %vm235_vm0, %v377_v43  ;;  %410 = vst.msk [vmem:[%s791_s24 + $0x50] sm:$0xff] %vm235_vm0, %v378_v45  ;;  %v392_v8 = vadd.f32 %v496_v46, %v353_v50  ;;  %v393_v10 = vadd.f32 %v496_v46, %v354_v54  ;;  %v394_v11 = vadd.f32 %v496_v46, %v355_v58 }
 0x123   : > { %411 = vst.msk [vmem:[%s791_s24 + $0x58] sm:$0xff] %vm235_vm0, %v379_v5  ;;  %412 = vst.msk [vmem:[%s791_s24 + $0x60] sm:$0xff] %vm235_vm0, %v380_v14  ;;  %v395_v15 = vadd.f32 %v496_v46, %v356_v62  ;;  %v396_v17 = vadd.f32 %v496_v46, %v357_v6  ;;  %v397_v19 = vadd.f32 %v496_v46, %v358_v13 }
 0x124   : > { %413 = vst.msk [vmem:[%s791_s24 + $0x68] sm:$0xff] %vm235_vm0, %v381_v47  ;;  %414 = vst.msk [vmem:[%s791_s24 + $0x70] sm:$0xff] %vm235_vm0, %v382_v48  ;;  %v398_v20 = vadd.f32 %v496_v46, %v359_v18  ;;  %v399_v22 = vadd.f32 %v496_v46, %v360_v23 }
 0x125   : > { %415 = vst.msk [vmem:[%s791_s24 + $0x78] sm:$0xff] %vm235_vm0, %v383_v51  ;;  %416 = vst.msk [vmem:[%s791_s24 + $0x80] sm:$0xff] %vm235_vm0, %v384_v52 }
 0x126   : > { %417 = vst.msk [vmem:[%s791_s24 + $0x88] sm:$0xff] %vm235_vm0, %v385_v53  ;;  %418 = vst.msk [vmem:[%s791_s24 + $0x90] sm:$0xff] %vm235_vm0, %v386_v56 }
 0x127   : > { %419 = vst.msk [vmem:[%s791_s24 + $0x98] sm:$0xff] %vm235_vm0, %v387_v57  ;;  %420 = vst.msk [vmem:[%s791_s24 + $0xa0] sm:$0xff] %vm235_vm0, %v388_v59 }
 0x128   : > { %421 = vst.msk [vmem:[%s791_s24 + $0xa8] sm:$0xff] %vm235_vm0, %v389_v61  ;;  %422 = vst.msk [vmem:[%s791_s24 + $0xb0] sm:$0xff] %vm235_vm0, %v390_v63 }
 0x129   : > { %423 = vst.msk [vmem:[%s791_s24 + $0xb8] sm:$0xff] %vm235_vm0, %v391_v4  ;;  %424 = vst.msk [vmem:[%s791_s24 + $0xc0] sm:$0xff] %vm235_vm0, %v392_v8 }
 0x12a   : > { %425 = vst.msk [vmem:[%s791_s24 + $0xc8] sm:$0xff] %vm235_vm0, %v393_v10  ;;  %426 = vst.msk [vmem:[%s791_s24 + $0xd0] sm:$0xff] %vm235_vm0, %v394_v11 }
 0x12b   : > { %427 = vst.msk [vmem:[%s791_s24 + $0xd8] sm:$0xff] %vm235_vm0, %v395_v15  ;;  %428 = vst.msk [vmem:[%s791_s24 + $0xe0] sm:$0xff] %vm235_vm0, %v396_v17 }
 0x12c   : > { %429 = vst.msk [vmem:[%s791_s24 + $0xe8] sm:$0xff] %vm235_vm0, %v397_v19  ;;  %430 = vst.msk [vmem:[%s791_s24 + $0xf0] sm:$0xff] %vm235_vm0, %v398_v20 }
 0x12d   : > { %431 = vst.msk [vmem:[%s791_s24 + $0xf8] sm:$0xff] %vm235_vm0, %v399_v22 }
 0x12e PF: > { %s13_s12 = sadd.s32 1, %s519_s12  }
 0x12f   : > { %p10_p4 = scmp.ge.s32.totalorder %s13_s12, 4  }
 0x131   :  { %12 = sbr.rel (!%p10_p4) target bundleno = 1 (0x1), region = 62 }

</bundles_post_ra>
